<compile_context>
chip_gen: v6e
topology: v6e:2x2x1
jax: 0.10.0
libtpu: 0.0.40
codegen_flags: <defaults>
</compile_context>

<pallas_src>
import functools

import jax
import jax.numpy as jnp
from jax.experimental import pallas as pl
from jax.experimental.pallas import tpu as pltpu

# Deterministic "parameters" from the module's __init__.
ALPHA = jnp.array([0.03108941, 0.02882475, 0.11244715, 0.82763869], dtype=jnp.float32)
GAMMA = 2  # integer power, matches the PyTorch default

LANES = 128  # TPU vreg lane width


def focal_loss_kernel(pred_ref, tgt_ref, alpha_ref, out_ref, acc_ref, *,
                      n_true, tile_r, num_classes):
    # pred_ref : (C, tile_r, 128) f32 VMEM  -- lane-dense sample tiles, one plane per class
    # tgt_ref  : (tile_r, 128)    i32 VMEM
    # alpha_ref: (C,)             f32 SMEM
    # out_ref  : (1, 1)           f32 SMEM  (final mean)
    # acc_ref  : (1, 1)           f32 SMEM scratch (running sum, persists across grid)
    i = pl.program_id(0)

    @pl.when(i == 0)
    def _init():
        acc_ref[0, 0] = jnp.float32(0.0)

    tgt = tgt_ref[...]                                   # (tile_r, 128) i32

    # Load the C class planes (each a fully dense (tile_r, 128) tile).
    rows = [pred_ref[c] for c in range(num_classes)]

    # Per-sample max over classes, unrolled on the VPU (no XLU reduce).
    m = rows[0]
    for c in range(1, num_classes):
        m = jnp.maximum(m, rows[c])

    # One pass over the classes: sum of exp, plus target-class selects for
    # the shifted logit, its exp (reused for pt), and alpha[target].
    sum_exp = jnp.zeros_like(m)
    shifted_t = jnp.zeros_like(m)      # logit_t - m
    exp_t = jnp.zeros_like(m)          # exp(logit_t - m)
    alpha_t = jnp.zeros_like(m)
    for c in range(num_classes):
        shifted = rows[c] - m
        e = jnp.exp(shifted)
        sum_exp = sum_exp + e
        sel = tgt == c
        shifted_t = jnp.where(sel, shifted, shifted_t)
        exp_t = jnp.where(sel, e, exp_t)
        alpha_t = jnp.where(sel, alpha_ref[c], alpha_t)

    # ce = logsumexp - logit_t ; pt = exp(-ce) without a second exp.
    ce = jnp.log(sum_exp) - shifted_t
    pt = exp_t / sum_exp               # exact divide (keeps 1e-5/1e-6 tolerance)
    omp = 1.0 - pt
    focal = alpha_t * (omp * omp) * ce  # gamma == 2 -> two VPU muls, no pow

    # Mask padded samples (global index >= N) before accumulating.
    row_iota = jax.lax.broadcasted_iota(jnp.int32, focal.shape, 0)
    lane_iota = jax.lax.broadcasted_iota(jnp.int32, focal.shape, 1)
    gidx = (i * tile_r + row_iota) * LANES + lane_iota
    focal = jnp.where(gidx < n_true, focal, 0.0)

    acc_ref[0, 0] += jnp.sum(focal)

    @pl.when(i == pl.num_programs(0) - 1)
    def _finalize():
        out_ref[0, 0] = acc_ref[0, 0] / n_true


def focal_loss(pred, target, alpha=ALPHA, tile_r=128):
    """pred: (N, C) logits, target: (N,) int class indices -> scalar mean focal loss."""
    N, C = pred.shape

    # Lane-dense repack: sample index spread over (sublane rows of 128 lanes).
    rows_needed = pl.cdiv(N, LANES)
    tile_r = max(8, min(tile_r, ((rows_needed + 7) // 8) * 8))
    num_tiles = pl.cdiv(rows_needed, tile_r)
    n_rows = num_tiles * tile_r
    n_pad = n_rows * LANES

    pred_cn = jnp.pad(pred.astype(jnp.float32).T, ((0, 0), (0, n_pad - N)))
    pred_cn = pred_cn.reshape(C, n_rows, LANES)                     # (C, rows, 128)
    tgt = jnp.pad(target.astype(jnp.int32), (0, n_pad - N)).reshape(n_rows, LANES)
    alpha_s = alpha.astype(jnp.float32).reshape(C)                  # (C,) -> SMEM

    kernel = functools.partial(
        focal_loss_kernel, n_true=N, tile_r=tile_r, num_classes=C)

    # NOTE: single "arbitrary" reduction axis; on v7x a leading size-2 "parallel"
    # axis with two partial sums could use the second TensorCore for very large N.
    out = pl.pallas_call(
        kernel,
        out_shape=jax.ShapeDtypeStruct((1, 1), jnp.float32),
        grid=(num_tiles,),
        in_specs=[
            pl.BlockSpec((C, tile_r, LANES), lambda i: (0, i, 0)),
            pl.BlockSpec((tile_r, LANES), lambda i: (i, 0)),
            pl.BlockSpec(memory_space=pltpu.MemorySpace.SMEM),
        ],
        out_specs=pl.BlockSpec(memory_space=pltpu.MemorySpace.SMEM),
        scratch_shapes=[pltpu.SMEM((1, 1), jnp.float32)],
        compiler_params=pltpu.CompilerParams(
            dimension_semantics=("arbitrary",)),
    )(pred_cn, tgt, alpha_s)
    return out[0, 0]


def focal_loss_ref(pred, target, alpha=ALPHA, gamma=GAMMA):
    # pure-JAX reference for validation
    logp = jax.nn.log_softmax(pred.astype(jnp.float32), axis=-1)
    ce = -jnp.take_along_axis(logp, target[:, None].astype(jnp.int32), axis=-1)[:, 0]
    pt = jnp.exp(-ce)
    return jnp.mean(alpha[target] * (1.0 - pt) ** gamma * ce)


if __name__ == "__main__":
    key = jax.random.PRNGKey(0)
    k1, k2, k3, k4 = jax.random.split(key, 4)

    # Small shape consistent with the 4-class alpha.
    N, C = 8, 4
    pred = jax.random.normal(k1, (N, C), dtype=jnp.float32)
    target = jax.random.randint(k2, (N,), 0, C, dtype=jnp.int32)

    out = focal_loss(pred, target)
    out = jax.block_until_ready(out)
    ref = focal_loss_ref(pred, target)
    assert jnp.allclose(out, ref, rtol=1e-5, atol=1e-6), (out, ref)

    # Second check: multi-tile grid + remainder masking path.
    N2 = 2500
    pred2 = jax.random.normal(k3, (N2, C), dtype=jnp.float32)
    target2 = jax.random.randint(k4, (N2,), 0, C, dtype=jnp.int32)
    out2 = jax.block_until_ready(focal_loss(pred2, target2, tile_r=8))
    ref2 = focal_loss_ref(pred2, target2)
    assert jnp.allclose(out2, ref2, rtol=1e-5, atol=1e-6), (out2, ref2)

    print("KERNEL_OK")
</pallas_src>

<mosaic_0001>
module attributes {stable_mosaic.version = 11 : i64} {
  func.func @focal_loss_kernel(%arg0: i32, %arg1: memref<4x8x128xf32, #tpu.memory_space<vmem>>, %arg2: memref<8x128xi32, #tpu.memory_space<vmem>>, %arg3: memref<4xf32, #tpu.memory_space<smem>>, %arg4: memref<1x1xf32, #tpu.memory_space<smem>>, %arg5: memref<1x1xf32, #tpu.memory_space<smem>>) attributes {dimension_semantics = [#tpu.dimension_semantics<arbitrary>], iteration_bounds = array<i64: 1>, scalar_prefetch = 0 : i64, scratch_operands = 1 : i64, tpu.core_type = #tpu.core_type<tc>, window_params = [{transform_indices = @transform_0, window_bounds = array<i64: 4, 8, 128>}, {transform_indices = @transform_1, window_bounds = array<i64: 8, 128>}, {transform_indices = @transform_2, window_bounds = array<i64: 4>}, {transform_indices = @transform_3, window_bounds = array<i64: 1, 1>}]} {
    %c0_i32 = arith.constant 0 : i32
    %0 = arith.cmpi eq, %arg0, %c0_i32 : i32
    %1 = arith.extui %0 : i1 to i32
    %c0_i32_0 = arith.constant 0 : i32
    %2 = arith.cmpi ne, %1, %c0_i32_0 : i32
    scf.if %2 {
      %cst_29 = arith.constant 0.000000e+00 : f32
      %c0_30 = arith.constant 0 : index
      %c0_31 = arith.constant 0 : index
      %89 = memref.load %arg5[%c0_30, %c0_31] : memref<1x1xf32, #tpu.memory_space<smem>>
      memref.store %cst_29, %arg5[%c0_30, %c0_31] : memref<1x1xf32, #tpu.memory_space<smem>>
    } else {
    }
    %c0 = arith.constant 0 : index
    %c0_1 = arith.constant 0 : index
    %3 = vector.load %arg2[%c0, %c0_1] : memref<8x128xi32, #tpu.memory_space<vmem>>, vector<8x128xi32>
    %c0_2 = arith.constant 0 : index
    %c0_3 = arith.constant 0 : index
    %c0_4 = arith.constant 0 : index
    %4 = vector.load %arg1[%c0_2, %c0_3, %c0_4] : memref<4x8x128xf32, #tpu.memory_space<vmem>>, vector<1x8x128xf32>
    %5 = vector.shape_cast %4 : vector<1x8x128xf32> to vector<8x128xf32>
    %c1 = arith.constant 1 : index
    %c0_5 = arith.constant 0 : index
    %c0_6 = arith.constant 0 : index
    %6 = vector.load %arg1[%c1, %c0_5, %c0_6] : memref<4x8x128xf32, #tpu.memory_space<vmem>>, vector<1x8x128xf32>
    %7 = vector.shape_cast %6 : vector<1x8x128xf32> to vector<8x128xf32>
    %c2 = arith.constant 2 : index
    %c0_7 = arith.constant 0 : index
    %c0_8 = arith.constant 0 : index
    %8 = vector.load %arg1[%c2, %c0_7, %c0_8] : memref<4x8x128xf32, #tpu.memory_space<vmem>>, vector<1x8x128xf32>
    %9 = vector.shape_cast %8 : vector<1x8x128xf32> to vector<8x128xf32>
    %c3 = arith.constant 3 : index
    %c0_9 = arith.constant 0 : index
    %c0_10 = arith.constant 0 : index
    %10 = vector.load %arg1[%c3, %c0_9, %c0_10] : memref<4x8x128xf32, #tpu.memory_space<vmem>>, vector<1x8x128xf32>
    %11 = vector.shape_cast %10 : vector<1x8x128xf32> to vector<8x128xf32>
    %12 = arith.maximumf %5, %7 : vector<8x128xf32>
    %13 = arith.maximumf %12, %9 : vector<8x128xf32>
    %14 = arith.maximumf %13, %11 : vector<8x128xf32>
    %cst = arith.constant 0.000000e+00 : f32
    %15 = vector.broadcast %cst : f32 to vector<8x128xf32>
    %cst_11 = arith.constant 0.000000e+00 : f32
    %16 = vector.broadcast %cst_11 : f32 to vector<8x128xf32>
    %cst_12 = arith.constant 0.000000e+00 : f32
    %17 = vector.broadcast %cst_12 : f32 to vector<8x128xf32>
    %cst_13 = arith.constant 0.000000e+00 : f32
    %18 = vector.broadcast %cst_13 : f32 to vector<8x128xf32>
    %19 = arith.subf %5, %14 : vector<8x128xf32>
    %20 = math.exp %19 : vector<8x128xf32>
    %21 = arith.addf %15, %20 : vector<8x128xf32>
    %c0_i32_14 = arith.constant 0 : i32
    %22 = vector.broadcast %c0_i32_14 : i32 to vector<8x128xi32>
    %23 = arith.cmpi eq, %3, %22 : vector<8x128xi32>
    %24 = arith.select %23, %19, %16 : vector<8x128xi1>, vector<8x128xf32>
    %25 = arith.select %23, %20, %17 : vector<8x128xi1>, vector<8x128xf32>
    %c0_15 = arith.constant 0 : index
    %26 = memref.load %arg3[%c0_15] : memref<4xf32, #tpu.memory_space<smem>>
    %27 = vector.broadcast %26 : f32 to vector<8x128xf32>
    %28 = arith.select %23, %27, %18 : vector<8x128xi1>, vector<8x128xf32>
    %29 = arith.subf %7, %14 : vector<8x128xf32>
    %30 = math.exp %29 : vector<8x128xf32>
    %31 = arith.addf %21, %30 : vector<8x128xf32>
    %c1_i32 = arith.constant 1 : i32
    %32 = vector.broadcast %c1_i32 : i32 to vector<8x128xi32>
    %33 = arith.cmpi eq, %3, %32 : vector<8x128xi32>
    %34 = arith.select %33, %29, %24 : vector<8x128xi1>, vector<8x128xf32>
    %35 = arith.select %33, %30, %25 : vector<8x128xi1>, vector<8x128xf32>
    %c1_16 = arith.constant 1 : index
    %36 = memref.load %arg3[%c1_16] : memref<4xf32, #tpu.memory_space<smem>>
    %37 = vector.broadcast %36 : f32 to vector<8x128xf32>
    %38 = arith.select %33, %37, %28 : vector<8x128xi1>, vector<8x128xf32>
    %39 = arith.subf %9, %14 : vector<8x128xf32>
    %40 = math.exp %39 : vector<8x128xf32>
    %41 = arith.addf %31, %40 : vector<8x128xf32>
    %c2_i32 = arith.constant 2 : i32
    %42 = vector.broadcast %c2_i32 : i32 to vector<8x128xi32>
    %43 = arith.cmpi eq, %3, %42 : vector<8x128xi32>
    %44 = arith.select %43, %39, %34 : vector<8x128xi1>, vector<8x128xf32>
    %45 = arith.select %43, %40, %35 : vector<8x128xi1>, vector<8x128xf32>
    %c2_17 = arith.constant 2 : index
    %46 = memref.load %arg3[%c2_17] : memref<4xf32, #tpu.memory_space<smem>>
    %47 = vector.broadcast %46 : f32 to vector<8x128xf32>
    %48 = arith.select %43, %47, %38 : vector<8x128xi1>, vector<8x128xf32>
    %49 = arith.subf %11, %14 : vector<8x128xf32>
    %50 = math.exp %49 : vector<8x128xf32>
    %51 = arith.addf %41, %50 : vector<8x128xf32>
    %c3_i32 = arith.constant 3 : i32
    %52 = vector.broadcast %c3_i32 : i32 to vector<8x128xi32>
    %53 = arith.cmpi eq, %3, %52 : vector<8x128xi32>
    %54 = arith.select %53, %49, %44 : vector<8x128xi1>, vector<8x128xf32>
    %55 = arith.select %53, %50, %45 : vector<8x128xi1>, vector<8x128xf32>
    %c3_18 = arith.constant 3 : index
    %56 = memref.load %arg3[%c3_18] : memref<4xf32, #tpu.memory_space<smem>>
    %57 = vector.broadcast %56 : f32 to vector<8x128xf32>
    %58 = arith.select %53, %57, %48 : vector<8x128xi1>, vector<8x128xf32>
    %59 = math.log %51 : vector<8x128xf32>
    %60 = arith.subf %59, %54 : vector<8x128xf32>
    %61 = arith.divf %55, %51 : vector<8x128xf32>
    %cst_19 = arith.constant 1.000000e+00 : f32
    %62 = vector.broadcast %cst_19 : f32 to vector<8x128xf32>
    %63 = arith.subf %62, %61 : vector<8x128xf32>
    %64 = arith.mulf %63, %63 : vector<8x128xf32>
    %65 = arith.mulf %58, %64 : vector<8x128xf32>
    %66 = arith.mulf %65, %60 : vector<8x128xf32>
    %67 = tpu.iota {dimensions = array<i32: 0>} : vector<8x128xi32>
    %68 = tpu.iota {dimensions = array<i32: 1>} : vector<8x128xi32>
    %c8_i32 = arith.constant 8 : i32
    %69 = arith.muli %arg0, %c8_i32 : i32
    %70 = vector.broadcast %69 : i32 to vector<8x128xi32>
    %71 = arith.addi %70, %67 : vector<8x128xi32>
    %c128_i32 = arith.constant 128 : i32
    %72 = vector.broadcast %c128_i32 : i32 to vector<8x128xi32>
    %73 = arith.muli %71, %72 : vector<8x128xi32>
    %74 = arith.addi %73, %68 : vector<8x128xi32>
    %c8_i32_20 = arith.constant 8 : i32
    %75 = vector.broadcast %c8_i32_20 : i32 to vector<8x128xi32>
    %76 = arith.cmpi slt, %74, %75 : vector<8x128xi32>
    %cst_21 = arith.constant 0.000000e+00 : f32
    %77 = vector.broadcast %cst_21 : f32 to vector<8x128xf32>
    %78 = arith.select %76, %66, %77 : vector<8x128xi1>, vector<8x128xf32>
    %c0_22 = arith.constant 0 : index
    %c0_23 = arith.constant 0 : index
    %79 = memref.load %arg5[%c0_22, %c0_23] : memref<1x1xf32, #tpu.memory_space<smem>>
    %80 = vector.shape_cast %78 : vector<8x128xf32> to vector<1x8x128xf32>
    %cst_24 = arith.constant dense<0.000000e+00> : vector<1xf32>
    %81 = vector.multi_reduction <add>, %80, %cst_24 [1, 2] : vector<1x8x128xf32> to vector<1xf32>
    %82 = vector.shape_cast %81 : vector<1xf32> to vector<1x1x1xf32>
    %83 = vector.extract %82[0, 0, 0] : f32 from vector<1x1x1xf32>
    %84 = arith.addf %79, %83 : f32
    %c0_25 = arith.constant 0 : index
    %c0_26 = arith.constant 0 : index
    %85 = memref.load %arg5[%c0_25, %c0_26] : memref<1x1xf32, #tpu.memory_space<smem>>
    memref.store %84, %arg5[%c0_25, %c0_26] : memref<1x1xf32, #tpu.memory_space<smem>>
    %c0_i32_27 = arith.constant 0 : i32
    %86 = arith.cmpi eq, %arg0, %c0_i32_27 : i32
    %87 = arith.extui %86 : i1 to i32
    %c0_i32_28 = arith.constant 0 : i32
    %88 = arith.cmpi ne, %87, %c0_i32_28 : i32
    scf.if %88 {
      %c0_29 = arith.constant 0 : index
      %c0_30 = arith.constant 0 : index
      %89 = memref.load %arg5[%c0_29, %c0_30] : memref<1x1xf32, #tpu.memory_space<smem>>
      %cst_31 = arith.constant 8.000000e+00 : f32
      %90 = arith.divf %89, %cst_31 : f32
      %c0_32 = arith.constant 0 : index
      %c0_33 = arith.constant 0 : index
      %91 = memref.load %arg4[%c0_32, %c0_33] : memref<1x1xf32, #tpu.memory_space<smem>>
      memref.store %90, %arg4[%c0_32, %c0_33] : memref<1x1xf32, #tpu.memory_space<smem>>
    } else {
    }
    return
  }
  func.func @transform_0(%arg0: i32) -> (i32, i32, i32) {
    %c0_i32 = arith.constant 0 : i32
    %c0_i32_0 = arith.constant 0 : i32
    %c0_i32_1 = arith.constant 0 : i32
    return %c0_i32, %arg0, %c0_i32_0 : i32, i32, i32
  }
  func.func @transform_1(%arg0: i32) -> (i32, i32) {
    %c0_i32 = arith.constant 0 : i32
    %c0_i32_0 = arith.constant 0 : i32
    return %arg0, %c0_i32 : i32, i32
  }
  func.func @transform_2(%arg0: i32) -> i32 {
    %c0_i32 = arith.constant 0 : i32
    %c0_i32_0 = arith.constant 0 : i32
    return %c0_i32 : i32
  }
  func.func @transform_3(%arg0: i32) -> (i32, i32) {
    %c0_i32 = arith.constant 0 : i32
    %c0_i32_0 = arith.constant 0 : i32
    %c0_i32_1 = arith.constant 0 : i32
    return %c0_i32, %c0_i32_0 : i32, i32
  }
}

</mosaic_0001>

<bundles_post_ra>
// kernel: tpu_custom_call.1
= control target key start
LH: loop header
LB: loop body
LE: loop exit
PB: predicated region body
PF: predicated region fallthrough
CT: control target
= control target key end

     0   :  { %8 = vsyncpa [#allocation4], 0  ;;  %s304_s0 = inlined_call_operand.hbm [shape: f32[4,8,128], index: 0, kind: input, shape index: {}]   ;;  %s305_s1 = inlined_call_operand.hbm [shape: s32[8,128], index: 1, kind: input, shape index: {}]   ;;  %s306_s2 = inlined_call_operand.vmem [shape: f32[4], index: 2, kind: input, shape index: {}]   ;;  %s307_s3 = inlined_call_operand.hbm [shape: f32[1,1], index: 3, kind: output, shape index: {}]  }
   0x1   :  { %9 = vsyncpa [#allocation8], 0 }
   0x2   :  { %10 = vsyncpa [#allocation6], 0 }
   0x3   :  { %11 = vsyncpa [#allocation5], 0  ;;  %s260_s12 = smov [#allocation3]  }
   0x4   :  { %s17_s13 = sshll.u32 %s260_s12, 4  ;;  %s18_s13 = int_to_ptr.vmem [resolvable:$true] %s17_s13 }
   0x5   :  { %s200_s14 = scalar_lea.vmem %s18_s13, 512  ;;  %p205_p1 = scmp.lt.s32.totalorder %s18_s13, %s18_s13 }
   0x6   :  { %p201_p0 = scmp.ne.s32.totalorder %s18_s13, %s200_s14  ;;  %p206_p2 = scmp.lt.s32.totalorder %s200_s14, %s200_s14 }
   0x8   :  { %p207_p3 = por %p206_p2, %p205_p1 }
   0xa   :  { %p208_p4 = pnand %p207_p3, %p201_p0 }
   0xc   :  { %211 = shalt.err (!%p208_p4)
}
   0xd   :  { %s261_s15 = smov 128   ;;  %s262_s16 = smov 8  }
   0xe   :  { %23 = dma.hbm_to_vmem [thread:$0]  %s304_s0, 512, %s18_s13, [#allocation4], %s261_s15, %s261_s15, %s262_s16  }
   0xf   :  { %s263_s19 = smov [#allocation7]   ;;  %s40_s23 = sshll.u32 %s306_s2, 4  ;;  %s41_s23 = int_to_ptr.vmem [resolvable:$true] %s40_s23 }
  0x10   :  { %s30_s20 = sshll.u32 %s263_s19, 4  ;;  %s31_s20 = int_to_ptr.vmem [resolvable:$true] %s30_s20 }
  0x11   :  { %s220_s24 = scalar_lea.vmem %s31_s20, 128  ;;  %p225_p6 = scmp.lt.s32.totalorder %s31_s20, %s31_s20 }
  0x12   :  { %p221_p5 = scmp.ne.s32.totalorder %s31_s20, %s220_s24  ;;  %p226_p7 = scmp.lt.s32.totalorder %s220_s24, %s220_s24 }
  0x14   :  { %p227_p8 = por %p226_p7, %p225_p6 }
  0x16   :  { %p228_p9 = pnand %p227_p8, %p221_p5 }
  0x18   :  { %231 = shalt.err (!%p228_p9)
}
  0x19   :  { %33 = dma.hbm_to_vmem [thread:$0]  %s305_s1, 128, %s31_s20, [#allocation8]  }
  0x1a   :  { %s232_s0 = scalar_lea.vmem %s41_s23, 16  ;;  %p237_p11 = scmp.lt.s32.totalorder %s41_s23, %s41_s23 }
  0x1b   :  { %p233_p10 = scmp.ne.s32.totalorder %s41_s23, %s232_s0  ;;  %p238_p12 = scmp.lt.s32.totalorder %s232_s0, %s232_s0 }
  0x1d   :  { %p239_p13 = por %p238_p12, %p237_p11 }
  0x1f   :  { %p240_p0 = pnand %p239_p13, %p233_p10 }
  0x21   :  { %243 = shalt.err (!%p240_p0)
}
  0x22   :  { %s264_s2 = smov [#allocation9]  }
  0x23   :  { %43 = dma.vmem_to_smem %s41_s23, 16, %s264_s2, [#allocation6]  }
  0x24   :  { %252 = dma.done.wait [#allocation4], 512  }
  0x25   :  { %253 = vsyncadd [#allocation4], 4294966784 }
  0x26   :  { %254 = dma.done.wait [#allocation8], 128  }
  0x27   :  { %255 = vsyncadd [#allocation8], 4294967168 }
  0x28   :  { %256 = dma.done.wait [#allocation6], 16  }
  0x29   :  { %257 = vsyncadd [#allocation6], 4294967280 }
  0x2a   :  { %53 = sfence }
  0x2b   :  { %v61_v0 = vld [vmem:[#allocation3] sm:$0xff]  ;;  %v63_v1 = vld [vmem:[#allocation3 + $0x8] sm:$0xff]  ;;  %v65_v2 = vld [vmem:[#allocation3 + $0x10] sm:$0xff]  ;;  %s78_s1 = sld [smem:[#allocation9]]  ;;  %v120_v26 = vlaneseq  ;;  %s265_s5 = smov [#allocation10]  }
  0x2c   :  { %v68_v3 = vmax.f32 %v61_v0, %v63_v1  ;;  %v67_v4 = vld [vmem:[#allocation3 + $0x18] sm:$0xff]  ;;  %v60_v21 = vld [vmem:[#allocation7] sm:$0xff]  ;;  %s169_s27 = sld [smem:[#allocation9 + $0x1]] }
  0x2d   :  { %vm75_vm0 = vcmp.eq.s32.totalorder %v60_v21, 0  ;;  %vm85_vm1 = vcmp.eq.s32.totalorder %v60_v21, 1  ;;  %s170_s28 = sld [smem:[#allocation9 + $0x2]]  ;;  %vm95_vm2 = vcmp.eq.s32.totalorder %v60_v21, 2  ;;  %vm105_vm3 = vcmp.eq.s32.totalorder %v60_v21, 3 }
  0x2e   :  { %v69_v5 = vmax.f32 %v68_v3, %v65_v2  ;;  %s171_s29 = sld [smem:[#allocation9 + $0x3]]  ;;  %v121_v32 = vshrl.u32 %v120_v26, 7  ;;  %v123_v39 = vand.u32 127, %v120_v26 }
  0x30   :  { %v70_v6 = vmax.f32 %v69_v5, %v67_v4  ;;  %v127_v40 = vmul.u32 128, %v121_v32 }
  0x31   :  { %v79_v24 = vstv %s78_s1 }
  0x32   :  { %v71_v7 = vsub.f32 %v61_v0, %v70_v6  ;;  %v81_v8 = vsub.f32 %v63_v1, %v70_v6  ;;  %v91_v9 = vsub.f32 %v65_v2, %v70_v6  ;;  %v101_v10 = vsub.f32 %v67_v4, %v70_v6 }
  0x33   :  { %v80_v28 = vsel %vm75_vm0, %v79_v24, 0.0  ;;  %v89_v29 = vstv %s169_s27  ;;  %v99_v34 = vstv %s170_s28  ;;  %v128_v48 = vadd.s32 %v127_v40, %v123_v39 }
  0x34   :  { %v72_v11 = vmul.f32 1.442695, %v71_v7  ;;  %v82_v12 = vmul.f32 1.442695, %v81_v8  ;;  %v92_v13 = vmul.f32 1.442695, %v91_v9  ;;  %v90_v33 = vsel %vm85_vm1, %v89_v29, %v80_v28 }
  0x35   :  { %v102_v14 = vmul.f32 1.442695, %v101_v10  ;;  %v76_v27 = vsel %vm75_vm0, %v71_v7, 0.0  ;;  %v100_v41 = vsel %vm95_vm2, %v99_v34, %v90_v33  ;;  %v109_v42 = vstv %s171_s29 }
  0x36   :  { %180 = vpow2.f32 %v72_v11  ;;  %v86_v31 = vsel %vm85_vm1, %v81_v8, %v76_v27  ;;  %v110_v47 = vsel %vm105_vm3, %v109_v42, %v100_v41  ;;  %vm129_vm4 = vcmp.lt.s32.totalorder %v128_v48, 8 }
  0x37   :  { %182 = vpow2.f32 %v82_v12  ;;  %v96_v37 = vsel %vm95_vm2, %v91_v9, %v86_v31 }
  0x38   :  { %184 = vpow2.f32 %v92_v13  ;;  %v106_v45 = vsel %vm105_vm3, %v101_v10, %v96_v37 }
  0x39   :  { %186 = vpow2.f32 %v102_v14 }
  0x43   :  { %v181_v15 = vpop.eup %180 }
  0x44   :  { %v183_v16 = vpop.eup %182  ;;  %v77_v23 = vsel %vm75_vm0, %v181_v15, 0.0 }
  0x45   :  { %v185_v17 = vpop.eup %184  ;;  %v84_v18 = vadd.f32 %v183_v16, %v181_v15  ;;  %v87_v25 = vsel %vm85_vm1, %v183_v16, %v77_v23 }
  0x46   :  { %v187_v19 = vpop.eup %186  ;;  %v97_v30 = vsel %vm95_vm2, %v185_v17, %v87_v25 }
  0x47   :  { %v94_v20 = vadd.f32 %v185_v17, %v84_v18  ;;  %v107_v35 = vsel %vm105_vm3, %v187_v19, %v97_v30 }
  0x49   :  { %v104_v22 = vadd.f32 %v187_v19, %v94_v20 }
  0x4b   :  { %188 = vlog2.f32 %v104_v22 }
  0x4c   :  { %190 = vrcp.f32 %v104_v22 }
  0x58   :  { %v189_v36 = vpop.eup %188 }
  0x59   :  { %v191_v38 = vpop.eup %190  ;;  %v112_v43 = vmul.f32 0.6931472, %v189_v36 }
  0x5a   :  { %v115_v44 = vmul.f32 %v191_v38, %v107_v35 }
  0x5b   :  { %v113_v49 = vsub.f32 %v112_v43, %v106_v45 }
  0x5c   :  { %v116_v46 = vsub.f32 1.0, %v115_v44 }
  0x5e   :  { %v117_v50 = vmul.f32 %v116_v46, %v116_v46 }
  0x60   :  { %v118_v51 = vmul.f32 %v117_v50, %v110_v47 }
  0x62   :  { %v119_v52 = vmul.f32 %v118_v51, %v113_v49 }
  0x64   :  { %v130_v53 = vsel %vm129_vm4, %v119_v52, 0.0 }
  0x65   :  { %132 = vadd.xlane.f32.xlu0 %v130_v53 }
  0xee   :  { %v133_v54 = vpop.xlane.xlu0 %132 }
  0xef   :  { %v134_v55 = vrot.slane %v133_v54, 4 }
  0xf1   :  { %v135_v56 = vadd.f32 %v134_v55, %v133_v54 }
  0xf3   :  { %v136_v57 = vrot.slane %v135_v56, 2 }
  0xf5   :  { %v137_v58 = vadd.f32 %v136_v57, %v135_v56 }
  0xf7   :  { %v138_v59 = vrot.slane %v137_v58, 1 }
  0xf9   :  { %v139_v60 = vadd.f32 %v138_v59, %v137_v58 }
  0xfb   :  { %172 = vpush %v139_v60 }
 0x12c   :  { %s173_s30 = spop %172 }
 0x12d   :  { %s150_s4 = smul.f32 0.125, %s173_s30 }
 0x12f   :  { %152 = sst [smem:[#allocation10]] %s150_s4 }
 0x130   :  { %160 = dma.smem_to_hbm %s265_s5, 16, %s307_s3, [#allocation5]  }
 0x131   :  { %258 = dma.done.wait [#allocation5], 16  }
 0x132   :  { %259 = vsyncadd [#allocation5], 4294967280 }
 0x133   :  { %164 = sfence }
 0x134   :  { %165 = vsyncpa [#allocation4], 1 }
 0x135   :  { %166 = vsyncpa [#allocation8], 1 }
 0x136   :  { %167 = vsyncpa [#allocation5], 1 }
 0x137   :  { %168 = vsyncpa [#allocation6], 1 }

</bundles_post_ra>
